<compile_context>
chip_gen: v7x
topology: tpu7x:2x2x1
jax: 0.10.0
libtpu: 0.0.40
codegen_flags: <defaults>
</compile_context>

<pallas_src>
import jax
import jax.numpy as jnp
from jax.experimental import pallas as pl
from jax.experimental.pallas import tpu as pltpu


_MiB = 1024 * 1024
_VMEM_BUDGET = 36 * _MiB      # target kernel working set (v7x has 64 MiB/TC)
_VMEM_LIMIT_CAP = 56 * _MiB


def _round_up(x, m):
    return (x + m - 1) // m * m


# ---------------------------------------------------------------------------
# Kernels
# ---------------------------------------------------------------------------
def _linear_kernel(x_ref, w_ref, b_ref, o_ref):
    # x_ref: (tm, E) native dtype; w_ref: (E, tn) compute dtype; b_ref: (1, tn) f32
    x = x_ref[...].astype(w_ref.dtype)            # in-kernel cast: VPU filler
    acc = jnp.dot(x, w_ref[...], preferred_element_type=jnp.float32)
    o_ref[...] = (acc + b_ref[...]).astype(o_ref.dtype)


def _linear_kernel_ksplit(x_ref, w_ref, b_ref, o_ref, acc_ref):
    # grid = (rows, vocab, K); K innermost + "arbitrary" -> accumulator pattern
    @pl.when(pl.program_id(2) == 0)
    def _():
        acc_ref[...] = jnp.zeros_like(acc_ref)

    x = x_ref[...].astype(w_ref.dtype)
    acc_ref[...] += jnp.dot(x, w_ref[...], preferred_element_type=jnp.float32)

    @pl.when(pl.program_id(2) == pl.num_programs(2) - 1)
    def _():
        o_ref[...] = (acc_ref[...] + b_ref[...]).astype(o_ref.dtype)


# ---------------------------------------------------------------------------
# One-time parameter preparation (hoisted out of the per-call path)
# ---------------------------------------------------------------------------
def prepare_morph_decoder_params(weight, bias, *, compute_dtype=jnp.bfloat16):
    """Call ONCE at model load.

    weight: [M, E] (PyTorch nn.Linear layout), bias: [M]
    returns (w_t [E, M_pad] compute_dtype, bias2d [1, M_pad] f32, M)

    Note: compute_dtype=bf16 quantizes weights/activations for the MXU
    (f32 accumulation); pass jnp.float32 for exact-f32 logits.
    """
    M, E = weight.shape
    # Lane-dense vocab padding; multiples of 256 for production vocabs so the
    # tiled path never falls back to a 128-wide vocab tile.
    M_pad = _round_up(M, 128) if M <= 256 else _round_up(M, 256)
    w_t = weight.T.astype(compute_dtype)
    b2d = bias.astype(jnp.float32).reshape(1, M)
    if M_pad != M:
        w_t = jnp.pad(w_t, ((0, 0), (0, M_pad - M)))
        b2d = jnp.pad(b2d, ((0, 0), (0, M_pad - M)))
    return w_t, b2d, M


# ---------------------------------------------------------------------------
# Tile selection helpers
# ---------------------------------------------------------------------------
def _choose_row_tile(rows, cap, align=8):
    """Pick (tm, rows_pad): tm multiple of `align`, <= cap, dividing rows_pad."""
    cap = max(align, cap // align * align)
    # keep >=2 row tiles when rows allow (v7x: both TensorCores get work)
    if rows >= 2 * align:
        cap = min(cap, max(align, (rows // 2) // align * align))
    if rows % align == 0:
        for cand in range(cap, align - 1, -align):
            if rows % cand == 0:
                # accept an exact divisor (no padded copy of x) unless it
                # fragments the grid badly
                if cand >= 128 or rows // cand <= 64:
                    return cand, rows
                break
    tm = min(cap, _round_up(rows, align))
    return tm, _round_up(rows, tm)


# ---------------------------------------------------------------------------
# Forward
# ---------------------------------------------------------------------------
def morph_decoder_forward(x, w_t, bias2d, morph_vocab_size, *, out_dtype=None):
    """
    x:       [B, S, E]   contextual embeddings (native dtype; cast in-kernel)
    w_t:     [E, M_pad]  prepared weight  (prepare_morph_decoder_params)
    bias2d:  [1, M_pad]  prepared f32 bias
    returns  [B, S, morph_vocab_size] logits (out_dtype, default x.dtype;
             pass jnp.bfloat16 to halve the output writeback when downstream
             argmax/top-k allows)
    """
    B, S, E = x.shape
    Ew, M_pad = w_t.shape
    assert Ew == E, (Ew, E)
    rows = B * S
    M = morph_vocab_size
    out_dtype = x.dtype if out_dtype is None else out_dtype

    x_sz = jnp.dtype(x.dtype).itemsize
    w_sz = jnp.dtype(w_t.dtype).itemsize
    o_sz = jnp.dtype(out_dtype).itemsize
    row_align = 16 if min(x_sz, o_sz) < 4 else 8   # sublane packing of 16-bit tiles

    # ---- path / tile selection under an explicit VMEM budget ---------------
    def _row_cap(tn_, fixed):
        for cand in (512, 384, 256, 128, 64, 32, 16, 8):
            if 2 * cand * E * x_sz + 2 * cand * tn_ * o_sz + fixed <= _VMEM_BUDGET:
                return cand
        return 8

    resident_fixed = 2 * E * M_pad * w_sz + 2 * M_pad * 4
    tk = E
    if resident_fixed + 2 * 16 * (E * x_sz + M_pad * o_sz) <= _VMEM_BUDGET:
        # Weight stays resident: 1-D grid over rows, weight DMA'd exactly once.
        path = "resident"
        tn = M_pad
        cap = _row_cap(M_pad, resident_fixed)
    else:
        tn = 512 if M_pad % 512 == 0 else (256 if M_pad % 256 == 0 else 128)
        tiled_fixed = 2 * E * tn * w_sz + 2 * tn * 4
        if tiled_fixed + 2 * 16 * (E * x_sz + tn * o_sz) <= _VMEM_BUDGET:
            path = "vocab_tiled"
            cap = _row_cap(tn, tiled_fixed)
        else:
            # Very large E: K-tiled fallback keeps per-buffer tiles bounded
            # under v7x's 64 MiB VMEM without shrinking tm/tn.
            tk = next((c for c in (2048, 1024, 512, 256, 128) if E % c == 0), 0)
            if tk:
                path = "k_split"
                fixed_k = 2 * tk * tn * w_sz + 2 * tn * 4
                cap = 8
                for cand in (512, 384, 256, 128, 64, 32, 16, 8):
                    fp = (2 * cand * tk * x_sz + 2 * cand * tn * o_sz
                          + cand * tn * 4 + fixed_k)
                    if fp <= _VMEM_BUDGET:
                        cap = cand
                        break
            else:
                # E not a multiple of 128 (unusual); fall back to small tiles.
                path = "vocab_tiled"
                tk = E
                cap = 8

    tm, rows_pad = _choose_row_tile(rows, cap, row_align)

    x2d = x.reshape(rows, E)
    if rows_pad != rows:
        x2d = jnp.pad(x2d, ((0, rows_pad - rows), (0, 0)))

    cost = pl.CostEstimate(
        flops=2 * rows_pad * E * M_pad,
        transcendentals=0,
        bytes_accessed=(rows_pad * E * x_sz + E * M_pad * w_sz
                        + M_pad * 4 + rows_pad * M_pad * o_sz),
    )

    if path == "resident":
        grid = (rows_pad // tm,)
        in_specs = [
            pl.BlockSpec((tm, E), lambda i: (i, 0)),          # x row tile
            pl.BlockSpec((E, M_pad), lambda i: (0, 0)),       # weight: constant block -> one DMA
            pl.BlockSpec((1, M_pad), lambda i: (0, 0)),       # bias
        ]
        out_specs = pl.BlockSpec((tm, M_pad), lambda i: (i, 0))
        scratch = []
        kernel = _linear_kernel
        semantics = ("parallel",)
        footprint = (2 * tm * E * x_sz + 2 * E * M_pad * w_sz
                     + 2 * tm * M_pad * o_sz + 2 * M_pad * 4)
    elif path == "vocab_tiled":
        grid = (rows_pad // tm, M_pad // tn)
        in_specs = [
            pl.BlockSpec((tm, E), lambda i, j: (i, 0)),
            pl.BlockSpec((E, tn), lambda i, j: (0, j)),
            pl.BlockSpec((1, tn), lambda i, j: (0, j)),
        ]
        out_specs = pl.BlockSpec((tm, tn), lambda i, j: (i, j))
        scratch = []
        kernel = _linear_kernel
        semantics = ("parallel", "parallel")
        footprint = (2 * tm * E * x_sz + 2 * E * tn * w_sz
                     + 2 * tm * tn * o_sz + 2 * tn * 4)
    else:  # k_split
        grid = (rows_pad // tm, M_pad // tn, E // tk)
        in_specs = [
            pl.BlockSpec((tm, tk), lambda i, j, k: (i, k)),
            pl.BlockSpec((tk, tn), lambda i, j, k: (k, j)),
            pl.BlockSpec((1, tn), lambda i, j, k: (0, j)),
        ]
        out_specs = pl.BlockSpec((tm, tn), lambda i, j, k: (i, j))
        scratch = [pltpu.VMEM((tm, tn), jnp.float32)]
        kernel = _linear_kernel_ksplit
        semantics = ("parallel", "parallel", "arbitrary")
        footprint = (2 * tm * tk * x_sz + 2 * tk * tn * w_sz
                     + 2 * tm * tn * o_sz + tm * tn * 4 + 2 * tn * 4)

    # Right-size the VMEM limit from the actual footprint (v7x: 64 MiB/TC).
    vmem_limit = int(min(_VMEM_LIMIT_CAP, max(2 * footprint, 16 * _MiB)))

    out = pl.pallas_call(
        kernel,
        out_shape=jax.ShapeDtypeStruct((rows_pad, M_pad), out_dtype),
        grid_spec=pltpu.PrefetchScalarGridSpec(
            num_scalar_prefetch=0,
            grid=grid,
            in_specs=in_specs,
            out_specs=out_specs,
            scratch_shapes=scratch,
        ),
        compiler_params=pltpu.CompilerParams(
            dimension_semantics=semantics,
            vmem_limit_bytes=vmem_limit,
        ),
        cost_estimate=cost,
    )(x2d, w_t, bias2d)

    return out[:rows, :M].reshape(B, S, M)


if __name__ == "__main__":
    # Small shapes consistent with the module's forward:
    #   batch=2, seq_len=8, embed_dim=32, morph_vocab_size=128
    B, S, E, M = 2, 8, 32, 128

    key = jax.random.PRNGKey(0)
    kx, kw, kb = jax.random.split(key, 3)

    x = jax.random.normal(kx, (B, S, E), dtype=jnp.float32)
    # Deterministic "nn.Linear(embed_dim, morph_vocab_size)" parameters.
    weight = jax.random.normal(kw, (M, E), dtype=jnp.float32) * (1.0 / jnp.sqrt(E))
    bias = jax.random.normal(kb, (M,), dtype=jnp.float32) * 0.01

    # Weight preparation is hoisted: done once at "model load" time.
    w_t, b2d, vocab = prepare_morph_decoder_params(weight, bias)

    logits = morph_decoder_forward(x, w_t, b2d, vocab)
    logits = jax.block_until_ready(logits)

    # Reference (dropout is identity at inference) with the same bf16
    # weight/activation quantization and f32 accumulation.
    xq = x.astype(jnp.bfloat16).astype(jnp.float32).reshape(B * S, E)
    wq = weight.astype(jnp.bfloat16).astype(jnp.float32)
    ref = (xq @ wq.T + bias).reshape(B, S, M)

    assert logits.shape == (B, S, M)
    max_err = float(jnp.max(jnp.abs(logits - ref)))
    assert jnp.allclose(logits, ref, atol=2e-3, rtol=2e-3), max_err

    print("KERNEL_OK")
</pallas_src>

<mosaic_0001>
module attributes {stable_mosaic.version = 11 : i64} {
  func.func @_linear_kernel(%arg0: i32, %arg1: memref<8x32xf32, #tpu.memory_space<vmem>>, %arg2: memref<32x128xbf16, #tpu.memory_space<vmem>>, %arg3: memref<1x128xf32, #tpu.memory_space<vmem>>, %arg4: memref<8x128xf32, #tpu.memory_space<vmem>>) attributes {dimension_semantics = [#tpu.dimension_semantics<parallel>], iteration_bounds = array<i64: 2>, scalar_prefetch = 0 : i64, scratch_operands = 0 : i64, tpu.core_type = #tpu.core_type<tc>, window_params = [{transform_indices = @transform_0, window_bounds = array<i64: 8, 32>}, {pipeline_mode = #tpu.pipeline_mode<synchronous>, transform_indices = @transform_1, window_bounds = array<i64: 32, 128>}, {pipeline_mode = #tpu.pipeline_mode<synchronous>, transform_indices = @transform_2, window_bounds = array<i64: 1, 128>}, {transform_indices = @transform_3, window_bounds = array<i64: 8, 128>}]} {
    %c0 = arith.constant 0 : index
    %c0_0 = arith.constant 0 : index
    %0 = vector.load %arg1[%c0, %c0_0] : memref<8x32xf32, #tpu.memory_space<vmem>>, vector<8x32xf32>
    %1 = arith.truncf %0 : vector<8x32xf32> to vector<8x32xbf16>
    %c0_1 = arith.constant 0 : index
    %c0_2 = arith.constant 0 : index
    %2 = vector.load %arg2[%c0_1, %c0_2] : memref<32x128xbf16, #tpu.memory_space<vmem>>, vector<32x128xbf16>
    %cst = arith.constant dense<0.000000e+00> : vector<8x128xf32>
    %3 = tpu.matmul %1, %2, %cst {dimension_numbers = #tpu.dot_dimension_numbers<[1], [0], [0], [1], [0, 0, 1, 1], [], []>} : vector<8x32xbf16>, vector<32x128xbf16>, vector<8x128xf32> -> vector<8x128xf32>
    %c0_3 = arith.constant 0 : index
    %c0_4 = arith.constant 0 : index
    %4 = vector.load %arg3[%c0_3, %c0_4] : memref<1x128xf32, #tpu.memory_space<vmem>>, vector<1x128xf32>
    %5 = vector.broadcast %4 : vector<1x128xf32> to vector<8x128xf32>
    %6 = arith.addf %3, %5 : vector<8x128xf32>
    %c0_5 = arith.constant 0 : index
    %c0_6 = arith.constant 0 : index
    %7 = vector.load %arg4[%c0_5, %c0_6] : memref<8x128xf32, #tpu.memory_space<vmem>>, vector<8x128xf32>
    tpu.vector_store %arg4[%c0_5, %c0_6], %6 {strides = array<i32>} : memref<8x128xf32, #tpu.memory_space<vmem>>, vector<8x128xf32>,
    return
  }
  func.func @transform_0(%arg0: i32) -> (i32, i32) {
    %c0_i32 = arith.constant 0 : i32
    %c0_i32_0 = arith.constant 0 : i32
    return %arg0, %c0_i32 : i32, i32
  }
  func.func @transform_1(%arg0: i32) -> (i32, i32) {
    %c0_i32 = arith.constant 0 : i32
    %c0_i32_0 = arith.constant 0 : i32
    %c0_i32_1 = arith.constant 0 : i32
    return %c0_i32, %c0_i32_0 : i32, i32
  }
  func.func @transform_2(%arg0: i32) -> (i32, i32) {
    %c0_i32 = arith.constant 0 : i32
    %c0_i32_0 = arith.constant 0 : i32
    %c0_i32_1 = arith.constant 0 : i32
    return %c0_i32, %c0_i32_0 : i32, i32
  }
  func.func @transform_3(%arg0: i32) -> (i32, i32) {
    %c0_i32 = arith.constant 0 : i32
    %c0_i32_0 = arith.constant 0 : i32
    return %arg0, %c0_i32 : i32, i32
  }
}

</mosaic_0001>

<bundles_post_ra>
// kernel: tpu_custom_call.1
= control target key start
LH: loop header
LB: loop body
LE: loop exit
PB: predicated region body
PF: predicated region fallthrough
CT: control target
= control target key end

     0   :  { %8 = vsyncpa [#allocation3], 0  ;;  %s814_s0 = inlined_call_operand.hbm [shape: f32[16,32], index: 0, kind: input, shape index: {}]   ;;  %s815_s1 = inlined_call_operand.hbm [shape: bf16[32,128], index: 1, kind: input, shape index: {}]   ;;  %s816_s2 = inlined_call_operand.vmem [shape: f32[1,128], index: 2, kind: input, shape index: {}]   ;;  %s817_s3 = inlined_call_operand.hbm [shape: f32[16,128], index: 3, kind: output, shape index: {}]  }
   0x1   :  { %10 = vsyncpa [#allocation3 + $0x1], 0 }
   0x2   :  { %11 = vsyncpa [#allocation6], 0 }
   0x3   :  { %12 = vsyncpa [#allocation4], 0 }
   0x4   :  { %14 = vsyncpa [#allocation4 + $0x1], 0  ;;  %s615_s12 = smov 0   ;;  %s617_s13 = smov 0  }
   0x5   :  { %s619_s14 = smov 0   ;;  %s621_s15 = smov 0  }
   0x6 LB: > { %s636_s16 = sadd.s32 4294967295, %s586_s15   ;;  %s366_s17 = sadd.s32 4294967294, %s586_s15   ;;  %s586_s15 = sphi %s621_s15, %s837_s15   ;;  %s582_s14 = sphi %s619_s14, %s836_s14   ;;  %s578_s13 = sphi %s617_s13, %s835_s13   ;;  %s574_s12 = sphi %s615_s12, %s834_s12  }
   0x7   : > { %p40_p0 = scmp.ne.s32.totalorder %s578_s13, %s574_s12  ;;  %p818_p1 = scmp.eq.s32.totalorder %s636_s16, 0 }
   0x8   : > { %p112_p3 = scmp.eq.s32.totalorder %s366_s17, 1  ;;  %p367_p5 = scmp.ge.s32.totalorder %s586_s15, 1 }
   0x9   : > { %p645_p4 = por %p818_p1, %p40_p0  ;;  %p119_p7 = scmp.lt.s32.totalorder %s586_s15, 3 }
   0xa   : > { %p650_p6 = por %p112_p3, %p40_p0  ;;  %s588_s21 = smov [#allocation5]  }
   0xb   : > { %s821_s18 = scalar_select %p645_p4, 1, 0 }
   0xc   : > { %s822_s19 = scalar_select %p650_p6, 1, 0 }
   0xd   : > { %p655_p8 = pnand %p367_p5, %p119_p7  ;;  %s131_s22 = sshll.u32 %s588_s21, 4  ;;  %s659_s22 = int_to_ptr.vmem [resolvable:$true] %s131_s22 }
   0xe   : > { %s671_s24 = sadd.s32 1, %s586_s15   ;;  %s27_s25 = sadd.s32 1, %s582_s14 }
   0xf   : > { %s823_s20 = scalar_select %p655_p8, 1, 0 }
  0x10   : > { %p403_p9 = pneg %p655_p8  ;;  %s24_s26 = ssub.s32 %s586_s15, %s671_s24 }
  0x11   : > { %s458_s29 = scalar_lea.hbm %s815_s1, 256 }
  0x12   : > { %p666_p11 = pnand %p403_p9, %p818_p1  ;;  %p459_p12 = scmp.ne.s32.totalorder %s815_s1, %s458_s29 }
  0x13   : > { %p465_p5 = scmp.lt.u32.totalorder %s458_s29, %s815_s1 }
  0x14   : > { %p460_p13 = pneg %p666_p11 }
  0x16   : > { %p461_p0 = pnand %p460_p13, %p459_p12 }
  0x18   : > { %p462_p3 = pneg %p461_p0 }
  0x1a   : > { %p467_p7 = pnand %p465_p5, %p462_p3 }
  0x1c   : > { %470 = shalt.err (!%p467_p7)
}
  0x1d   : > { %s471_s7 = scalar_lea.vmem %s659_s22, 256  ;;  %p479_p2 = scmp.lt.s32.totalorder %s659_s22, %s659_s22 }
  0x1e   : > { %p472_p9 = scmp.ne.s32.totalorder %s659_s22, %s471_s7  ;;  %p480_p6 = scmp.lt.s32.totalorder %s471_s7, %s471_s7 }
  0x20   : > { %p474_p10 = pnand %p472_p9, %p460_p13  ;;  %p481_p4 = por %p480_p6, %p479_p2 }
  0x22   : > { %p475_p1 = pneg %p474_p10 }
  0x24   : > { %p482_p8 = pnand %p481_p4, %p475_p1 }
  0x26   : > { %485 = shalt.err (!%p482_p8)
}
  0x27   : > { %s589_s8 = smov 64   ;;  %s590_s9 = smov 4  }
  0x28   : > { %406 = dma.hbm_to_vmem [thread:$0]  (!%p666_p11), %s815_s1, 256, %s659_s22, [#allocation6], %s589_s8, %s589_s8, %s590_s9  }
  0x29   : > { %p25_p2 = scmp.eq.s32.totalorder %s24_s26, 0  ;;  %p34_p1 = scmp.ne.s32.totalorder %s582_s14, %s578_s13 }
  0x2a   : > { %p35_p4 = scmp.eq.s32.totalorder %s586_s15, 0  ;;  %p416_p6 = scmp.lt.s32.totalorder %s586_s15, 2 }
  0x2b   : > { %s702_s17 = scalar_select %p25_p2, %s582_s14, %s27_s25  }
  0x2c   : > { %p36_p8 = por %p35_p4, %p34_p1  ;;  %p825_p10 = scmp.eq.s32.totalorder %s636_s16, 1 }
  0x2d   : > { %s148_s27 = sand.u32 1, %s582_s14   ;;  %s371_s28 = sshll.u32 %s586_s15, 7 }
  0x2e   : > { %p706_p12 = por %p825_p10, %p34_p1  ;;  %s370_s29 = sshll.u32 %s148_s27, 3 }
  0x2f   : > { %s715_s4 = scalar_lea.hbm %s814_s0, %s371_s28  ;;  %s152_s22 = scalar_lea.vmem [#allocation2], %s370_s29 }
  0x30   : > { %s159_s25 = sshll.u32 %s152_s22, 4  ;;  %p717_p11 = pnand %p416_p6, %p36_p8  ;;  %s721_s25 = int_to_ptr.vmem [resolvable:$true] %s159_s25 }
  0x31   : > { %s149_s5 = scalar_lea.sflag [#allocation3], %s148_s27  ;;  %s486_s6 = scalar_lea.hbm %s715_s4, 128 }
  0x32   : > { %p487_p13 = scmp.ne.s32.totalorder %s715_s4, %s486_s6  ;;  %p488_p0 = pneg %p717_p11 }
  0x33   : > { %s491_s9 = scalar_lea.hbm %s814_s0, 256  ;;  %p492_p7 = scmp.lt.u32.totalorder %s715_s4, %s814_s0 }
  0x34   : > { %p489_p3 = pnand %p488_p0, %p487_p13  ;;  %p493_p9 = scmp.lt.u32.totalorder %s491_s9, %s486_s6 }
  0x35   : > { %p495_p1 = scmp.lt.u32.totalorder %s486_s6, %s715_s4 }
  0x36   : > { %p490_p5 = pneg %p489_p3  ;;  %p494_p2 = por %p493_p9, %p492_p7 }
  0x38   : > { %p496_p4 = por %p495_p1, %p494_p2 }
  0x3a   : > { %p497_p6 = pnand %p496_p4, %p490_p5 }
  0x3c   : > { %500 = shalt.err (!%p497_p6)
}
  0x3d   : > { %s501_s27 = scalar_lea.vmem %s721_s25, 128  ;;  %s591_s28 = smov [#allocation2]  }
  0x3e   : > { %p502_p8 = scmp.ne.s32.totalorder %s721_s25, %s501_s27  ;;  %s506_s29 = sshll.u32 %s591_s28, 4  ;;  %s507_s29 = int_to_ptr.vmem [resolvable:$false] %s506_s29 }
  0x3f   : > { %s508_s23 = scalar_lea.vmem %s507_s29, 256  ;;  %p509_p3 = scmp.lt.s32.totalorder %s721_s25, %s507_s29 }
  0x40   : > { %p504_p10 = pnand %p502_p8, %p488_p0  ;;  %p510_p7 = scmp.lt.s32.totalorder %s508_s23, %s501_s27 }
  0x42   : > { %p505_p13 = pneg %p504_p10  ;;  %p511_p9 = por %p510_p7, %p509_p3 }
  0x44   : > { %p512_p2 = pnand %p511_p9, %p505_p13 }
  0x46   : > { %515 = shalt.err (!%p512_p2)
}
  0x47   : > { %410 = dma.hbm_to_vmem [thread:$0]  (!%p717_p11), %s715_s4, 128, %s721_s25, %s149_s5  }
  0x48   : > { %p828_p5 = scmp.ne.s32.totalorder %s823_s20, 0 }
  0x49   : > { %s751_s30 = sand.u32 (!%p828_p5), 1, %s578_s13   ;;  %p829_p0 = scmp.ne.s32.totalorder (!%p828_p5), %s821_s18, 0 }
  0x4a   : > { %168 = sbr.rel (%p828_p5) target bundleno = 322 (0x142), region = 32  ;;  %s373_s22 = sshll.u32 (!%p828_p5), %s751_s30, 3 }
  0x4b   : > { %s171_s6 = scalar_lea.sflag (!%p828_p5), [#allocation3], %s751_s30  ;;  %s174_s7 = scalar_lea.vmem (!%p828_p5), [#allocation2], %s373_s22 }
  0x51   : > { %561 = dma.done.wait (%p829_p0), %s171_s6, 128  }
  0x52   : > { %563 = vsyncadd (%p829_p0), %s171_s6, 4294967168  ;;  %p830_p1 = scmp.eq.s32.totalorder %s636_s16, 0 }
  0x54   : > { %565 = dma.done.wait (%p830_p1), [#allocation6], 256   ;;  %p831_p11 = pmov %p830_p1 }
  0x55   : > { %v592_v0 = vmov 0.0   ;;  %vm593_vm0 = vmmov 0   ;;  %v456_v1 = vld [vmem:[#allocation5] sm:$0xff]   ;;  %v457_v2 = vld [vmem:[#allocation5 + $0x8] sm:$0xff]   ;;  %v202_v3 = vld [vmem:[%s174_s7] sm:$0xff]  ;;  %vm227_vm1 = vcmask 261120  }
  0x56   : > { %567 = vsyncadd (%p831_p11), [#allocation6], 4294967040  ;;  %387 = vmatprep.subr.bf16.mxu0 %v592_v0  ;;  %391 = vmatprep.mubr.msk.bf16.mxu0 %vm593_vm0, %v592_v0  ;;  %v203_v4 = vpack.c.bf16 %v202_v3, %v202_v3  ;;  %v376_v5 = vld [vmem:[%s816_s2] ss:$0 sm:$0xff]  ;;  %s381_s4 = sshll.u32 %s636_s16, 7  ;;  %s200_s25 = scalar_lea.vmem [#allocation7], %s373_s22 }
  0x57   : > { %388 = vmatpush3.bf16.msra.mxu0 %v456_v1  ;;  %s286_s26 = sshll.u32 %s200_s25, 4  ;;  %s770_s9 = scalar_lea.hbm %s817_s3, %s381_s4  ;;  %s772_s26 = int_to_ptr.vmem [resolvable:$true] %s286_s26 }
  0x58   : > { %389 = vmatprep.subr.bf16.mxu0 %v592_v0  ;;  %s273_s10 = scalar_lea.sflag [#allocation4], %s751_s30  ;;  %s516_s16 = scalar_lea.vmem %s772_s26, 128 }
  0x59   : > { %p517_p4 = scmp.ne.s32.totalorder %s772_s26, %s516_s16  ;;  %s594_s11 = smov [#allocation7]  }
  0x5a   : > { %s520_s27 = sshll.u32 %s594_s11, 4  ;;  %s521_s27 = int_to_ptr.vmem [resolvable:$false] %s520_s27 }
  0x5b   : > { %390 = vmatpush3.bf16.msra.mxu0 %v457_v2  ;;  %p518_p6 = pnand %p517_p4, %p706_p12  ;;  %s522_s28 = scalar_lea.vmem %s521_s27, 256 }
  0x5c   : > { %p523_p10 = scmp.lt.s32.totalorder %s772_s26, %s521_s27  ;;  %p524_p13 = scmp.lt.s32.totalorder %s522_s28, %s516_s16 }
  0x5d   : > { %p519_p8 = pneg %p518_p6 }
  0x5e   : > { %392 = vmatmul.mubr.msk.bf16.vlgmr.msra.gmra.mrb[0].mxu0 %vm227_vm1, %v203_v4  ;;  %p525_p3 = por %p524_p13, %p523_p10 }
  0x60   : > { %p526_p7 = pnand %p525_p3, %p519_p8 }
 0x131   : > { %v265_v6 = vpop.f32.mrb[0].mxu0 }
 0x132   : > { %v266_v7 = vadd.f32 %v376_v5, %v265_v6  ;;  %v393_v8 = vpop.f32.mrb[1].mxu0 }
 0x133   : > { %v268_v9 = vpop.f32.mrb[2].mxu0 }
 0x134   : > { %271 = vst [vmem:[%s200_s25] sm:$0xff] %v266_v7  ;;  %v394_v10 = vpop.f32.mrb[3].mxu0 }
 0x135   : > { %529 = shalt.err (!%p526_p7)
}
 0x136   : > { %s530_s29 = scalar_lea.hbm %s770_s9, 128  ;;  %s534_s22 = scalar_lea.hbm %s817_s3, 256 }
 0x137   : > { %p531_p9 = scmp.ne.s32.totalorder %s770_s9, %s530_s29  ;;  %p535_p0 = scmp.lt.u32.totalorder %s770_s9, %s817_s3 }
 0x138   : > { %p536_p1 = scmp.lt.u32.totalorder %s534_s22, %s530_s29  ;;  %p538_p4 = scmp.lt.u32.totalorder %s530_s29, %s770_s9 }
 0x139   : > { %p532_p2 = pnand %p531_p9, %p706_p12 }
 0x13a   : > { %p537_p11 = por %p536_p1, %p535_p0 }
 0x13b   : > { %p533_p5 = pneg %p532_p2 }
 0x13c   : > { %p539_p6 = por %p538_p4, %p537_p11 }
 0x13e   : > { %p540_p8 = pnand %p539_p6, %p533_p5 }
 0x140   : > { %543 = shalt.err (!%p540_p8)
}
 0x141   : > { %401 = dma.vmem_to_hbm [thread:$0]  (%p706_p12), %s772_s26, 128, %s770_s9, %s273_s10  }
 0x142 PF: > { %s298_s18 = sand.u32 1, %s574_s12   ;;  %p832_p10 = scmp.ne.s32.totalorder %s822_s19, 0 }
 0x143   : > { %p833_p13 = scmp.ge.s32.totalorder %s586_s15, 2  ;;  %s299_s20 = scalar_lea.sflag [#allocation4], %s298_s18 }
 0x145   : > { %p412_p3 = pnand %p833_p13, %p832_p10 }
 0x147   : > { %569 = dma.done.wait (!%p412_p3), %s299_s20, 128  }
 0x148   : > { %571 = vsyncadd (!%p412_p3), %s299_s20, 4294967168  ;;  %p17_p7 = scmp.ge.s32.totalorder %s671_s24, 4   ;;  %s834_s12 = smov %s578_s13 }
 0x149   : > { %s835_s13 = smov %s582_s14  ;;  %s836_s14 = smov %s702_s17 }
 0x14a   : > { %s837_s15 = smov %s671_s24  ;;  %19 = sbr.rel (!%p17_p7) target bundleno = 6 (0x6), region = 81 }
 0x151   :  { %304 = vsyncpa [#allocation3], 1 }
 0x152   :  { %306 = vsyncpa [#allocation3 + $0x1], 1 }
 0x153   :  { %307 = vsyncpa [#allocation6], 1 }
 0x154   :  { %308 = vsyncpa [#allocation4], 1 }
 0x155   :  { %310 = vsyncpa [#allocation4 + $0x1], 1 }

</bundles_post_ra>
